<compile_context>
chip_gen: v7x
topology: tpu7x:2x2x1
jax: 0.10.0
libtpu: 0.0.40
codegen_flags: <defaults>
</compile_context>

<pallas_src>
import jax
import jax.numpy as jnp
from jax.experimental import pallas as pl
from jax.experimental.pallas import tpu as pltpu


def sgns_kernel(center_ref, target_ref, out_ref):
    # center_ref / target_ref: dense (BM, E) tiles of gathered embedding rows.
    c = center_ref[...]                                # (BM, E)
    g = target_ref[...]                                # (BM, E)
    if c.dtype != jnp.float32:                         # static branch; no-op for f32 tables
        c = c.astype(jnp.float32)
        g = g.astype(jnp.float32)
    logits = jnp.sum(c * g, axis=-1)                   # (BM,) per-example dot products
    out_ref[...] = logits.reshape(out_ref.shape)       # lane-dense (1, BM) store


@jax.jit
def sgns_forward(hidden_w, target_w, x, t):
    """hidden_w/target_w: (V, E) float32 tables; x, t: (B,) int32 indices -> (B,) logits."""
    V, E = hidden_w.shape
    B = x.shape[0]

    # Examples per grid step: a multiple of 128 so the packed logit output is
    # a lane-dense tile; capped at 512 so the double-buffered VMEM footprint
    # (2 inputs x 2 buffers x BM x E x 4B) stays small even for large E
    # (well under v7x's 64 MiB VMEM).
    BM = min(512, 128 * pl.cdiv(B, 128))
    G = pl.cdiv(B, BM)
    B_pad = G * BM

    xi = jnp.pad(x.astype(jnp.int32), (0, B_pad - B))  # pad with index 0 (valid row)
    ti = jnp.pad(t.astype(jnp.int32), (0, B_pad - B))

    # Row gather hoisted to the wrapper (review option (a)); the kernel sees
    # dense, full-tile (BM, E) blocks via plain BlockSpecs.
    center = jnp.take(hidden_w, xi, axis=0)            # (B_pad, E)
    target = jnp.take(target_w, ti, axis=0)            # (B_pad, E)

    out = pl.pallas_call(
        sgns_kernel,
        out_shape=jax.ShapeDtypeStruct((G, BM), jnp.float32),
        grid_spec=pltpu.PrefetchScalarGridSpec(
            num_scalar_prefetch=0,
            grid=(G,),
            in_specs=[
                pl.BlockSpec((BM, E), lambda i: (i, 0)),
                pl.BlockSpec((BM, E), lambda i: (i, 0)),
            ],
            out_specs=pl.BlockSpec((1, BM), lambda i: (i, 0)),
        ),
        compiler_params=pltpu.CompilerParams(
            dimension_semantics=("parallel",)),       # batch blocks are independent
    )(center, target)

    # torch: bmm -> [B,1,1] -> squeeze -> reshape([-1]) -> [B]
    return out.reshape(-1)[:B]


def sgns_reference(hidden_w, target_w, x, t):
    c = hidden_w[x]            # (B, E)
    g = target_w[t]            # (B, E)
    return jnp.sum(c * g, axis=-1)


if __name__ == "__main__":
    vocab_size = 64
    embedding_size = 128
    batch = 8

    key = jax.random.PRNGKey(0)
    k_h, k_t, k_x, k_tt = jax.random.split(key, 4)

    # Deterministic init matching torch: uniform(-0.5/E, 0.5/E)
    default_w = 0.5 / embedding_size
    hidden_w = jax.random.uniform(
        k_h, (vocab_size, embedding_size), jnp.float32, -default_w, default_w)
    target_w = jax.random.uniform(
        k_t, (vocab_size, embedding_size), jnp.float32, -default_w, default_w)

    x = jax.random.randint(k_x, (batch,), 0, vocab_size, dtype=jnp.int32)
    t = jax.random.randint(k_tt, (batch,), 0, vocab_size, dtype=jnp.int32)

    logits = sgns_forward(hidden_w, target_w, x, t)
    logits = jax.block_until_ready(logits)

    ref = sgns_reference(hidden_w, target_w, x, t)
    assert logits.shape == (batch,)
    assert jnp.allclose(logits, ref, atol=1e-6, rtol=1e-5)

    print("KERNEL_OK")
</pallas_src>

<mosaic_0001>
module attributes {stable_mosaic.version = 11 : i64} {
  func.func @sgns_kernel(%arg0: i32, %arg1: memref<128x128xf32, #tpu.memory_space<vmem>>, %arg2: memref<128x128xf32, #tpu.memory_space<vmem>>, %arg3: memref<1x128xf32, #tpu.memory_space<vmem>>) attributes {dimension_semantics = [#tpu.dimension_semantics<parallel>], iteration_bounds = array<i64: 1>, scalar_prefetch = 0 : i64, scratch_operands = 0 : i64, tpu.core_type = #tpu.core_type<tc>, window_params = [{transform_indices = @transform_0, window_bounds = array<i64: 128, 128>}, {transform_indices = @transform_1, window_bounds = array<i64: 128, 128>}, {transform_indices = @transform_2, window_bounds = array<i64: 1, 128>}]} {
    %c0 = arith.constant 0 : index
    %c0_0 = arith.constant 0 : index
    %0 = vector.load %arg1[%c0, %c0_0] : memref<128x128xf32, #tpu.memory_space<vmem>>, vector<128x128xf32>
    %c0_1 = arith.constant 0 : index
    %c0_2 = arith.constant 0 : index
    %1 = vector.load %arg2[%c0_1, %c0_2] : memref<128x128xf32, #tpu.memory_space<vmem>>, vector<128x128xf32>
    %2 = arith.mulf %0, %1 : vector<128x128xf32>
    %cst = arith.constant dense<0.000000e+00> : vector<128xf32>
    %3 = vector.multi_reduction <add>, %2, %cst [1] : vector<128x128xf32> to vector<128xf32>
    %4 = vector.shape_cast %3 : vector<128xf32> to vector<1x128xf32>
    %c0_3 = arith.constant 0 : index
    %c0_4 = arith.constant 0 : index
    %5 = vector.load %arg3[%c0_3, %c0_4] : memref<1x128xf32, #tpu.memory_space<vmem>>, vector<1x128xf32>
    tpu.vector_store %arg3[%c0_3, %c0_4], %4 {strides = array<i32>} : memref<1x128xf32, #tpu.memory_space<vmem>>, vector<1x128xf32>,
    return
  }
  func.func @transform_0(%arg0: i32) -> (i32, i32) {
    %c0_i32 = arith.constant 0 : i32
    %c0_i32_0 = arith.constant 0 : i32
    return %arg0, %c0_i32 : i32, i32
  }
  func.func @transform_1(%arg0: i32) -> (i32, i32) {
    %c0_i32 = arith.constant 0 : i32
    %c0_i32_0 = arith.constant 0 : i32
    return %arg0, %c0_i32 : i32, i32
  }
  func.func @transform_2(%arg0: i32) -> (i32, i32) {
    %c0_i32 = arith.constant 0 : i32
    %c0_i32_0 = arith.constant 0 : i32
    return %arg0, %c0_i32 : i32, i32
  }
}

</mosaic_0001>

<bundles_post_ra>
// kernel: sgns_forward.1
= control target key start
LH: loop header
LB: loop body
LE: loop exit
PB: predicated region body
PF: predicated region fallthrough
CT: control target
= control target key end

     0   :  { %v107_v48 = vlaneseq  ;;  %vm118_vm0 = vcmask 130112   ;;  %vm125_vm1 = vcmask 195712   ;;  %vm132_vm2 = vcmask 261312   ;;  %s374_s0 = inlined_call_operand.vmem [shape: f32[128,128], index: 0, kind: input, shape index: {}]   ;;  %s375_s1 = inlined_call_operand.vmem [shape: f32[128,128], index: 1, kind: input, shape index: {}]   ;;  %s376_s2 = inlined_call_operand.vmem [shape: f32[1,128], index: 2, kind: output, shape index: {}]  }
   0x1   :  { %v11_v0 = vld [vmem:[%s374_s0] sm:$0xff]  ;;  %v13_v2 = vld [vmem:[%s374_s0 + $0x10] sm:$0xff]  ;;  %v12_v5 = vld [vmem:[%s374_s0 + $0x8] sm:$0xff]  ;;  %vm139_vm3 = vcmask 326912   ;;  %vm146_vm4 = vcmask 392512   ;;  %vm153_vm5 = vcmask 458112  }
   0x2   :  { %v27_v1 = vld [vmem:[%s375_s1] sm:$0xff]  ;;  %v29_v4 = vld [vmem:[%s375_s1 + $0x10] sm:$0xff]  ;;  %v28_v6 = vld [vmem:[%s375_s1 + $0x8] sm:$0xff]  ;;  %v335_v49 = vand.u32 127, %v107_v48  ;;  %v337_v50 = vshrl.u32 %v107_v48, 7  ;;  %vm160_vm6 = vcmask 523712  }
   0x3   :  { %v43_v3 = vmul.f32 %v27_v1, %v11_v0  ;;  %v45_v7 = vmul.f32 %v29_v4, %v13_v2  ;;  %v14_v8 = vld [vmem:[%s374_s0 + $0x18] sm:$0xff]  ;;  %v44_v10 = vmul.f32 %v28_v6, %v12_v5  ;;  %v15_v12 = vld [vmem:[%s374_s0 + $0x20] sm:$0xff]  ;;  %v16_v14 = vld [vmem:[%s374_s0 + $0x28] sm:$0xff]  ;;  %vm167_vm7 = vcmask 589312  }
   0x4   :  { %v30_v9 = vld [vmem:[%s375_s1 + $0x18] sm:$0xff]  ;;  %v31_v13 = vld [vmem:[%s375_s1 + $0x20] sm:$0xff]  ;;  %v32_v15 = vld [vmem:[%s375_s1 + $0x28] sm:$0xff]  ;;  %v113_v51 = vadd.s32 4294967288, %v335_v49  ;;  %v120_v52 = vadd.s32 4294967280, %v335_v49  ;;  %v127_v53 = vadd.s32 4294967272, %v335_v49  ;;  %v111_v55 = vsub.s32 %v335_v49, %v337_v50 }
   0x5   :  { %59 = vadd.xlane.f32.xlu0 %v43_v3  ;;  %63 = vadd.xlane.f32.xlu1 %v45_v7  ;;  %v46_v11 = vmul.f32 %v30_v9, %v14_v8  ;;  %v47_v16 = vmul.f32 %v31_v13, %v15_v12  ;;  %v48_v17 = vmul.f32 %v32_v15, %v16_v14  ;;  %v17_v18 = vld [vmem:[%s374_s0 + $0x30] sm:$0xff]  ;;  %v18_v20 = vld [vmem:[%s374_s0 + $0x38] sm:$0xff]  ;;  %v19_v24 = vld [vmem:[%s374_s0 + $0x40] sm:$0xff]  ;;  %v134_v58 = vadd.s32 4294967264, %v335_v49 }
   0x6   :  { %v33_v19 = vld [vmem:[%s375_s1 + $0x30] sm:$0xff]  ;;  %v34_v21 = vld [vmem:[%s375_s1 + $0x38] sm:$0xff]  ;;  %v35_v25 = vld [vmem:[%s375_s1 + $0x40] sm:$0xff]  ;;  %v116_v57 = vsub.s32 %v113_v51, %v337_v50  ;;  %v123_v59 = vsub.s32 %v120_v52, %v337_v50  ;;  %v130_v60 = vsub.s32 %v127_v53, %v337_v50  ;;  %v141_v61 = vadd.s32 4294967256, %v335_v49 }
   0x7   :  { %v49_v22 = vmul.f32 %v33_v19, %v17_v18  ;;  %v50_v23 = vmul.f32 %v34_v21, %v18_v20  ;;  %v20_v26 = vld [vmem:[%s374_s0 + $0x48] sm:$0xff]  ;;  %v51_v28 = vmul.f32 %v35_v25, %v19_v24  ;;  %v21_v30 = vld [vmem:[%s374_s0 + $0x50] sm:$0xff]  ;;  %v22_v32 = vld [vmem:[%s374_s0 + $0x58] sm:$0xff]  ;;  %v137_v2 = vsub.s32 %v134_v58, %v337_v50 }
   0x8   :  { %v36_v27 = vld [vmem:[%s375_s1 + $0x48] sm:$0xff]  ;;  %v37_v31 = vld [vmem:[%s375_s1 + $0x50] sm:$0xff]  ;;  %v38_v33 = vld [vmem:[%s375_s1 + $0x58] sm:$0xff]  ;;  %v148_v3 = vadd.s32 4294967248, %v335_v49  ;;  %v144_v6 = vsub.s32 %v141_v61, %v337_v50  ;;  %v155_v7 = vadd.s32 4294967240, %v335_v49  ;;  %v162_v15 = vadd.s32 4294967232, %v335_v49 }
   0x9   :  { %61 = vadd.xlane.f32.xlu0 %v44_v10  ;;  %65 = vadd.xlane.f32.xlu1 %v46_v11  ;;  %v52_v29 = vmul.f32 %v36_v27, %v20_v26  ;;  %v53_v34 = vmul.f32 %v37_v31, %v21_v30  ;;  %v54_v35 = vmul.f32 %v38_v33, %v22_v32  ;;  %v23_v36 = vld [vmem:[%s374_s0 + $0x60] sm:$0xff]  ;;  %v24_v38 = vld [vmem:[%s374_s0 + $0x68] sm:$0xff]  ;;  %v25_v42 = vld [vmem:[%s374_s0 + $0x70] sm:$0xff]  ;;  %v169_v18 = vadd.s32 4294967224, %v335_v49 }
   0xa   :  { %v39_v37 = vld [vmem:[%s375_s1 + $0x60] sm:$0xff]  ;;  %v40_v39 = vld [vmem:[%s375_s1 + $0x68] sm:$0xff]  ;;  %v41_v43 = vld [vmem:[%s375_s1 + $0x70] sm:$0xff]  ;;  %v151_v14 = vsub.s32 %v148_v3, %v337_v50  ;;  %v176_v24 = vadd.s32 4294967216, %v335_v49  ;;  %vm174_vm8 = vcmask 654912   ;;  %vm181_vm9 = vcmask 720512  }
   0xb   :  { %v55_v40 = vmul.f32 %v39_v37, %v23_v36  ;;  %v56_v41 = vmul.f32 %v40_v39, %v24_v38  ;;  %v26_v44 = vld [vmem:[%s374_s0 + $0x78] sm:$0xff]  ;;  %v57_v46 = vmul.f32 %v41_v43, %v25_v42  ;;  %v172_v27 = vsub.s32 %v169_v18, %v337_v50 }
   0xc   :  { %v42_v45 = vld [vmem:[%s375_s1 + $0x78] sm:$0xff]  ;;  %v179_v33 = vsub.s32 %v176_v24, %v337_v50  ;;  %v197_v38 = vadd.s32 4294967192, %v335_v49  ;;  %v211_v48 = vadd.s32 4294967176, %v335_v49  ;;  %vm188_vm10 = vcmask 786112  }
   0xd   :  { %67 = vadd.xlane.f32.xlu0 %v47_v16  ;;  %69 = vadd.xlane.f32.xlu1 %v48_v17  ;;  %v58_v47 = vmul.f32 %v42_v45, %v26_v44  ;;  %v158_v17 = vsub.s32 %v155_v7, %v337_v50  ;;  %v204_v44 = vadd.s32 4294967184, %v335_v49  ;;  %vm195_vm11 = vcmask 851712  }
   0xe   :  { %v214_v58 = vsub.s32 %v211_v48, %v337_v50  ;;  %vm202_vm12 = vcmask 917312   ;;  %vm209_vm13 = vcmask 982912   ;;  %vm216_vm14 = vcmask 1048512  }
  0x11   :  { %71 = vadd.xlane.f32.xlu0 %v49_v22  ;;  %73 = vadd.xlane.f32.xlu1 %v50_v23  ;;  %v165_v23 = vsub.s32 %v162_v15, %v337_v50 }
  0x15   :  { %75 = vadd.xlane.f32.xlu0 %v51_v28  ;;  %77 = vadd.xlane.f32.xlu1 %v52_v29  ;;  %v183_v28 = vadd.s32 4294967208, %v335_v49 }
  0x17   :  { %v186_v37 = vsub.s32 %v183_v28, %v337_v50 }
  0x19   :  { %79 = vadd.xlane.f32.xlu0 %v53_v34  ;;  %81 = vadd.xlane.f32.xlu1 %v54_v35  ;;  %v190_v34 = vadd.s32 4294967200, %v335_v49 }
  0x1b   :  { %v193_v43 = vsub.s32 %v190_v34, %v337_v50 }
  0x1d   :  { %83 = vadd.xlane.f32.xlu0 %v55_v40  ;;  %85 = vadd.xlane.f32.xlu1 %v56_v41 }
  0x21   :  { %87 = vadd.xlane.f32.xlu0 %v57_v46  ;;  %89 = vadd.xlane.f32.xlu1 %v58_v47  ;;  %v200_v47 = vsub.s32 %v197_v38, %v337_v50 }
  0x92   :  { %v60_v54 = vpop.xlane.xlu0 %59  ;;  %v64_v56 = vpop.xlane.xlu1 %63 }
  0x93   :  { %v112_v63 = vrot.slane %v60_v54, %v111_v55  ;;  %v124_v4 = vrot.slane %v64_v56, %v123_v59  ;;  %v207_v55 = vsub.s32 %v204_v44, %v337_v50 }
  0x96   :  { %v62_v62 = vpop.xlane.xlu0 %61  ;;  %v66_v1 = vpop.xlane.xlu1 %65 }
  0x97   :  { %v117_v0 = vrot.slane %v62_v62, %v116_v57  ;;  %v131_v5 = vrot.slane %v66_v1, %v130_v60 }
  0x99   :  { %v119_v8 = vsel %vm118_vm0, %v117_v0, %v112_v63 }
  0x9a   :  { %v126_v9 = vsel %vm125_vm1, %v124_v4, %v119_v8  ;;  %v68_v10 = vpop.xlane.xlu0 %67  ;;  %v70_v13 = vpop.xlane.xlu1 %69 }
  0x9b   :  { %v133_v11 = vsel %vm132_vm2, %v131_v5, %v126_v9  ;;  %v138_v12 = vrot.slane %v68_v10, %v137_v2  ;;  %v145_v16 = vrot.slane %v70_v13, %v144_v6 }
  0x9d   :  { %v140_v19 = vsel %vm139_vm3, %v138_v12, %v133_v11 }
  0x9e   :  { %v72_v20 = vpop.xlane.xlu0 %71  ;;  %v74_v22 = vpop.xlane.xlu1 %73  ;;  %v147_v25 = vsel %vm146_vm4, %v145_v16, %v140_v19 }
  0x9f   :  { %v152_v21 = vrot.slane %v72_v20, %v151_v14  ;;  %v159_v26 = vrot.slane %v74_v22, %v158_v17 }
  0xa1   :  { %v154_v29 = vsel %vm153_vm5, %v152_v21, %v147_v25 }
  0xa2   :  { %v76_v30 = vpop.xlane.xlu0 %75  ;;  %v78_v32 = vpop.xlane.xlu1 %77  ;;  %v161_v35 = vsel %vm160_vm6, %v159_v26, %v154_v29 }
  0xa3   :  { %v166_v31 = vrot.slane %v76_v30, %v165_v23  ;;  %v173_v36 = vrot.slane %v78_v32, %v172_v27 }
  0xa5   :  { %v168_v39 = vsel %vm167_vm7, %v166_v31, %v161_v35 }
  0xa6   :  { %v80_v40 = vpop.xlane.xlu0 %79  ;;  %v82_v42 = vpop.xlane.xlu1 %81  ;;  %v175_v45 = vsel %vm174_vm8, %v173_v36, %v168_v39 }
  0xa7   :  { %v180_v41 = vrot.slane %v80_v40, %v179_v33  ;;  %v187_v46 = vrot.slane %v82_v42, %v186_v37 }
  0xa9   :  { %v182_v51 = vsel %vm181_vm9, %v180_v41, %v175_v45 }
  0xaa   :  { %v84_v52 = vpop.xlane.xlu0 %83  ;;  %v86_v54 = vpop.xlane.xlu1 %85  ;;  %v189_v56 = vsel %vm188_vm10, %v187_v46, %v182_v51 }
  0xab   :  { %v194_v53 = vrot.slane %v84_v52, %v193_v43  ;;  %v201_v57 = vrot.slane %v86_v54, %v200_v47 }
  0xad   :  { %v196_v59 = vsel %vm195_vm11, %v194_v53, %v189_v56 }
  0xae   :  { %v88_v60 = vpop.xlane.xlu0 %87  ;;  %v90_v62 = vpop.xlane.xlu1 %89  ;;  %v203_v49 = vsel %vm202_vm12, %v201_v57, %v196_v59 }
  0xaf   :  { %v208_v61 = vrot.slane %v88_v60, %v207_v55  ;;  %v215_v63 = vrot.slane %v90_v62, %v214_v58 }
  0xb1   :  { %v210_v0 = vsel %vm209_vm13, %v208_v61, %v203_v49 }
  0xb2   :  { %v217_v1 = vsel %vm216_vm14, %v215_v63, %v210_v0 }
  0xb3   :  { %219 = vst [vmem:[%s376_s2] sm:$0x1] %v217_v1 }

</bundles_post_ra>
